<compile_context>
chip_gen: v6e
topology: v6e:2x2x1
jax: 0.10.0
libtpu: 0.0.40
codegen_flags: <defaults>
</compile_context>

<pallas_src>
import functools

import jax
import jax.numpy as jnp
from jax.experimental import pallas as pl
from jax.experimental.pallas import tpu as pltpu


def _round_up(x, m):
    return ((x + m - 1) // m) * m


# ---------------------------------------------------------------------------
# Tiled matmul kernels:  y = x @ W (+ b)      (1x1 conv == per-pixel matmul)
# ---------------------------------------------------------------------------
def _mm_kernel(x_ref, w_ref, o_ref, acc_ref):
    @pl.when(pl.program_id(2) == 0)
    def _():
        acc_ref[...] = jnp.zeros_like(acc_ref)

    acc_ref[...] += jnp.dot(x_ref[...], w_ref[...],
                            preferred_element_type=jnp.float32)

    @pl.when(pl.program_id(2) == pl.num_programs(2) - 1)
    def _():
        o_ref[...] = acc_ref[...].astype(o_ref.dtype)


def _mm_bias_kernel(x_ref, w_ref, b_ref, o_ref, acc_ref):
    @pl.when(pl.program_id(2) == 0)
    def _():
        acc_ref[...] = jnp.zeros_like(acc_ref)

    acc_ref[...] += jnp.dot(x_ref[...], w_ref[...],
                            preferred_element_type=jnp.float32)

    @pl.when(pl.program_id(2) == pl.num_programs(2) - 1)
    def _():
        o_ref[...] = (acc_ref[...] + b_ref[...]).astype(o_ref.dtype)


def matmul(x, w, bias=None, *, tm=256, tn=256, tk=256):
    """x: (M, K), w: (K, N), bias: (N,) or None  ->  (M, N)."""
    M, K = x.shape
    _, N = w.shape
    # Clamp tiles to the (padded) problem size, keeping (8, 128) alignment.
    tm = min(tm, _round_up(M, 8))
    tn = min(tn, _round_up(N, 128))
    tk = min(tk, _round_up(K, 128))
    Mp, Kp, Np = _round_up(M, tm), _round_up(K, tk), _round_up(N, tn)

    xp = x if (Mp, Kp) == (M, K) else jnp.pad(x, ((0, Mp - M), (0, Kp - K)))
    wp = w if (Kp, Np) == (K, N) else jnp.pad(w, ((0, Kp - K), (0, Np - N)))

    in_specs = [pl.BlockSpec((tm, tk), lambda i, j, k: (i, k)),
                pl.BlockSpec((tk, tn), lambda i, j, k: (k, j))]
    args = [xp, wp]
    if bias is None:
        kernel = _mm_kernel
    else:
        bp = bias if Np == N else jnp.pad(bias, (0, Np - N))
        args.append(bp.reshape(1, Np))
        in_specs.append(pl.BlockSpec((1, tn), lambda i, j, k: (0, j)))
        kernel = _mm_bias_kernel

    out = pl.pallas_call(
        kernel,
        out_shape=jax.ShapeDtypeStruct((Mp, Np), x.dtype),
        grid=(Mp // tm, Np // tn, Kp // tk),
        in_specs=in_specs,
        out_specs=pl.BlockSpec((tm, tn), lambda i, j, k: (i, j)),
        scratch_shapes=[pltpu.VMEM((tm, tn), jnp.float32)],
        compiler_params=pltpu.CompilerParams(
            dimension_semantics=("parallel", "parallel", "arbitrary")),
    )(*args)
    if (Mp, Np) != (M, N):
        out = out[:M, :N]
    return out


# ---------------------------------------------------------------------------
# Fused linear-attention core (per batch element, all heads in one block)
# ---------------------------------------------------------------------------
def _linear_attention_kernel(qkv_ref, o_ref, *, heads, dim_head):
    hidden = heads * dim_head
    qkv = qkv_ref[0]                               # (N, 3*hidden), lane-dense
    q = qkv[:, 0:hidden]
    k = qkv[:, hidden:2 * hidden].astype(jnp.float32)
    v = qkv[:, 2 * hidden:3 * hidden]

    # softmax of k over the spatial axis (rows), independently per channel.
    k = k - jnp.max(k, axis=0, keepdims=True)
    e = jnp.exp(k)
    inv = pl.reciprocal(jnp.sum(e, axis=0, keepdims=True), approx=True)
    k_sm = (e * inv).astype(v.dtype)

    outs = []
    for h in range(heads):                         # static unroll; heads small
        s = h * dim_head
        kh = k_sm[:, s:s + dim_head]               # (N, d)
        vh = v[:, s:s + dim_head]                  # (N, d)
        qh = q[:, s:s + dim_head]                  # (N, d)
        # context[d, e] = sum_n k[n, d] * v[n, e]
        ctx = jax.lax.dot_general(kh, vh, (((0,), (0,)), ((), ())),
                                  preferred_element_type=jnp.float32)
        # out[n, e] = sum_d q[n, d] * context[d, e]
        outs.append(jnp.dot(qh, ctx.astype(qh.dtype),
                            preferred_element_type=jnp.float32))
    o_ref[0] = jnp.concatenate(outs, axis=-1).astype(o_ref.dtype)


def linear_attention_core(qkv, heads, dim_head):
    """qkv: (B, N, 3*hidden)  ->  (B, N, hidden), head-major channels."""
    B, N, three_hidden = qkv.shape
    hidden = heads * dim_head
    kernel = functools.partial(_linear_attention_kernel,
                               heads=heads, dim_head=dim_head)
    # TODO(synk): for very large spatial sizes (per-batch N*3*hidden block
    # exceeding the VMEM budget) this should stream over N with a two-pass
    # softmax + context accumulation.
    return pl.pallas_call(
        kernel,
        out_shape=jax.ShapeDtypeStruct((B, N, hidden), qkv.dtype),
        grid=(B,),
        in_specs=[pl.BlockSpec((1, N, three_hidden), lambda b: (b, 0, 0))],
        out_specs=pl.BlockSpec((1, N, hidden), lambda b: (b, 0, 0)),
        compiler_params=pltpu.CompilerParams(dimension_semantics=("parallel",)),
    )(qkv)


# ---------------------------------------------------------------------------
# Module forward (NCHW in / NCHW out, matching the PyTorch module)
# ---------------------------------------------------------------------------
def linear_attention(x_nchw, params, heads, dim_head):
    B, C, H, W = x_nchw.shape
    N = H * W
    hidden = heads * dim_head
    # NCHW -> (B*N, C) channels-last (plain-JAX layout glue).
    x = x_nchw.reshape(B, C, N).transpose(0, 2, 1).reshape(B * N, C)
    # Fused QKV projection (single bias-free 1x1 conv == one matmul).
    qkv = matmul(x, params["w_qkv"]).reshape(B, N, 3 * hidden)
    # Fused softmax(k) + k^T v + q @ context, per batch.
    out = linear_attention_core(qkv, heads, dim_head)            # (B, N, hidden)
    # Output 1x1 conv with bias.
    y = matmul(out.reshape(B * N, hidden), params["w_out"], params["b_out"])
    return y.reshape(B, N, C).transpose(0, 2, 1).reshape(B, C, H, W)


# ---------------------------------------------------------------------------
# Pure-JAX reference mirroring the PyTorch forward exactly (for verification)
# ---------------------------------------------------------------------------
def _reference(x, params, heads, dim_head):
    B, C, H, W = x.shape
    hidden = heads * dim_head
    qkv = jnp.einsum('bchw,cf->bfhw', x, params["w_qkv"])
    qkv = qkv.reshape(B, 3, heads, dim_head, H * W)
    q, k, v = qkv[:, 0], qkv[:, 1], qkv[:, 2]                    # (B, h, d, n)
    k = jax.nn.softmax(k, axis=-1)
    context = jnp.einsum('bhdn,bhen->bhde', k, v)
    out = jnp.einsum('bhde,bhdn->bhen', context, q)
    out = out.reshape(B, hidden, H, W)
    y = jnp.einsum('bfhw,fc->bchw', out, params["w_out"])
    return y + params["b_out"][None, :, None, None]


if __name__ == "__main__":
    dim, heads, dim_head = 32, 4, 32          # module defaults: heads=4, dim_head=32
    B, Hs, Ws = 2, 16, 16
    hidden = heads * dim_head

    key = jax.random.PRNGKey(0)
    kx, kq, ko, kb = jax.random.split(key, 4)
    x = jax.random.normal(kx, (B, dim, Hs, Ws), dtype=jnp.float32)
    params = {
        "w_qkv": 0.05 * jax.random.normal(kq, (dim, 3 * hidden), jnp.float32),
        "w_out": 0.05 * jax.random.normal(ko, (hidden, dim), jnp.float32),
        "b_out": 0.05 * jax.random.normal(kb, (dim,), jnp.float32),
    }

    out = linear_attention(x, params, heads, dim_head)
    out = jax.block_until_ready(out)

    assert out.shape == (B, dim, Hs, Ws) and out.dtype == jnp.float32
    assert bool(jnp.all(jnp.isfinite(out)))
    ref = _reference(x, params, heads, dim_head)
    assert bool(jnp.allclose(out, ref, rtol=2e-2, atol=2e-3)), \
        float(jnp.max(jnp.abs(out - ref)))
    print("KERNEL_OK")
</pallas_src>

<mosaic_0001>
module attributes {stable_mosaic.version = 11 : i64} {
  func.func @_mm_kernel(%arg0: i32, %arg1: i32, %arg2: i32, %arg3: memref<256x128xf32, #tpu.memory_space<vmem>>, %arg4: memref<128x256xf32, #tpu.memory_space<vmem>>, %arg5: memref<256x256xf32, #tpu.memory_space<vmem>>, %arg6: memref<256x256xf32, #tpu.memory_space<vmem>>) attributes {dimension_semantics = [#tpu.dimension_semantics<parallel>, #tpu.dimension_semantics<parallel>, #tpu.dimension_semantics<arbitrary>], iteration_bounds = array<i64: 2, 2, 1>, scalar_prefetch = 0 : i64, scratch_operands = 1 : i64, tpu.core_type = #tpu.core_type<tc>, window_params = [{transform_indices = @transform_0, window_bounds = array<i64: 256, 128>}, {transform_indices = @transform_1, window_bounds = array<i64: 128, 256>}, {transform_indices = @transform_2, window_bounds = array<i64: 256, 256>}]} {
    %c0_i32 = arith.constant 0 : i32
    %0 = arith.cmpi eq, %arg2, %c0_i32 : i32
    %1 = arith.extui %0 : i1 to i32
    %c0_i32_0 = arith.constant 0 : i32
    %2 = arith.cmpi ne, %1, %c0_i32_0 : i32
    scf.if %2 {
      %cst_10 = arith.constant 0.000000e+00 : f32
      %12 = vector.broadcast %cst_10 : f32 to vector<256x256xf32>
      %c0_11 = arith.constant 0 : index
      %c0_12 = arith.constant 0 : index
      %13 = vector.load %arg6[%c0_11, %c0_12] : memref<256x256xf32, #tpu.memory_space<vmem>>, vector<256x256xf32>
      tpu.vector_store %arg6[%c0_11, %c0_12], %12 {strides = array<i32>} : memref<256x256xf32, #tpu.memory_space<vmem>>, vector<256x256xf32>,
    } else {
    }
    %c0 = arith.constant 0 : index
    %c0_1 = arith.constant 0 : index
    %3 = vector.load %arg6[%c0, %c0_1] : memref<256x256xf32, #tpu.memory_space<vmem>>, vector<256x256xf32>
    %c0_2 = arith.constant 0 : index
    %c0_3 = arith.constant 0 : index
    %4 = vector.load %arg3[%c0_2, %c0_3] : memref<256x128xf32, #tpu.memory_space<vmem>>, vector<256x128xf32>
    %c0_4 = arith.constant 0 : index
    %c0_5 = arith.constant 0 : index
    %5 = vector.load %arg4[%c0_4, %c0_5] : memref<128x256xf32, #tpu.memory_space<vmem>>, vector<128x256xf32>
    %cst = arith.constant dense<0.000000e+00> : vector<256x256xf32>
    %6 = tpu.matmul %4, %5, %cst {dimension_numbers = #tpu.dot_dimension_numbers<[1], [0], [0], [1], [0, 0, 1, 1], [], []>} : vector<256x128xf32>, vector<128x256xf32>, vector<256x256xf32> -> vector<256x256xf32>
    %7 = arith.addf %3, %6 : vector<256x256xf32>
    %c0_6 = arith.constant 0 : index
    %c0_7 = arith.constant 0 : index
    %8 = vector.load %arg6[%c0_6, %c0_7] : memref<256x256xf32, #tpu.memory_space<vmem>>, vector<256x256xf32>
    tpu.vector_store %arg6[%c0_6, %c0_7], %7 {strides = array<i32>} : memref<256x256xf32, #tpu.memory_space<vmem>>, vector<256x256xf32>,
    %c0_i32_8 = arith.constant 0 : i32
    %9 = arith.cmpi eq, %arg2, %c0_i32_8 : i32
    %10 = arith.extui %9 : i1 to i32
    %c0_i32_9 = arith.constant 0 : i32
    %11 = arith.cmpi ne, %10, %c0_i32_9 : i32
    scf.if %11 {
      %c0_10 = arith.constant 0 : index
      %c0_11 = arith.constant 0 : index
      %12 = vector.load %arg6[%c0_10, %c0_11] : memref<256x256xf32, #tpu.memory_space<vmem>>, vector<256x256xf32>
      %c0_12 = arith.constant 0 : index
      %c0_13 = arith.constant 0 : index
      %13 = vector.load %arg5[%c0_12, %c0_13] : memref<256x256xf32, #tpu.memory_space<vmem>>, vector<256x256xf32>
      tpu.vector_store %arg5[%c0_12, %c0_13], %12 {strides = array<i32>} : memref<256x256xf32, #tpu.memory_space<vmem>>, vector<256x256xf32>,
    } else {
    }
    return
  }
  func.func @transform_0(%arg0: i32, %arg1: i32, %arg2: i32) -> (i32, i32) {
    %c0_i32 = arith.constant 0 : i32
    return %arg0, %arg2 : i32, i32
  }
  func.func @transform_1(%arg0: i32, %arg1: i32, %arg2: i32) -> (i32, i32) {
    %c0_i32 = arith.constant 0 : i32
    return %arg2, %arg1 : i32, i32
  }
  func.func @transform_2(%arg0: i32, %arg1: i32, %arg2: i32) -> (i32, i32) {
    %c0_i32 = arith.constant 0 : i32
    return %arg0, %arg1 : i32, i32
  }
}

</mosaic_0001>

<bundles_post_ra>
// kernel: tpu_custom_call.1
= control target key start
LH: loop header
LB: loop body
LE: loop exit
PB: predicated region body
PF: predicated region fallthrough
CT: control target
= control target key end

     0   :  { %s1966_s0 = inlined_call_operand.hbm [shape: f32[512,128], index: 0, kind: input, shape index: {}]   ;;  %s1967_s1 = inlined_call_operand.hbm [shape: f32[128,512], index: 1, kind: input, shape index: {}]   ;;  %s1968_s2 = inlined_call_operand.hbm [shape: f32[512,512], index: 2, kind: output, shape index: {}]  }
   0x1   :  { %1976 = sst [smem:[#allocation18_spill]] %s1966_s0 }
   0x2   :  { %1977 = sst [smem:[#allocation19_spill]] %s1968_s2 }
   0x3   :  { %7 = vsyncpa [#allocation4], 0 }
   0x4   :  { %9 = vsyncpa [#allocation4 + $0x1], 0 }
   0x5   :  { %10 = vsyncpa [#allocation7], 0 }
   0x6   :  { %12 = vsyncpa [#allocation7 + $0x1], 0 }
   0x7   :  { %13 = vsyncpa [#allocation5], 0 }
   0x8   :  { %15 = vsyncpa [#allocation5 + $0x1], 0  ;;  %s1512_s9 = smov 0   ;;  %s1514_s10 = smov 0  }
   0x9   :  { %s1516_s11 = smov 0   ;;  %s1518_s12 = smov 0  }
   0xa   :  { %s1520_s13 = smov 0   ;;  %s1522_s14 = smov 0  }
   0xb   :  { %s1524_s15 = smov 0   ;;  %s1526_s16 = smov 0  }
   0xc   :  { %s1528_s17 = smov 0   ;;  %s1530_s18 = smov 0  }
   0xd   :  { %s1532_s19 = smov 0   ;;  %s1534_s20 = smov 0  }
   0xe   :  { %s1536_s21 = smov 0   ;;  %s1538_s22 = smov 0  }
   0xf LB: > { %1978 = sst [smem:[#allocation12_spill]] %s1471_s19  ;;  %s1083_s23 = sadd.s32 4294967295, %s1483_s22   ;;  %s1483_s22 = sphi %s1538_s22, %s21_s22   ;;  %s1479_s21 = sphi %s1536_s21, %s2006_s21   ;;  %s1475_s20 = sphi %s1534_s20, %s2017_s20   ;;  %s1471_s19 = sphi %s1532_s19, %s2004_s19   ;;  %s1467_s18 = sphi %s1530_s18, %s2016_s18   ;;  %s1463_s17 = sphi %s1528_s17, %s2015_s17   ;;  %s1459_s16 = sphi %s1526_s16, %s2014_s16   ;;  %s1455_s15 = sphi %s1524_s15, %s2013_s15   ;;  %s1451_s14 = sphi %s1522_s14, %s2012_s14   ;;  %s1447_s13 = sphi %s1520_s13, %s2011_s13   ;;  %s1443_s12 = sphi %s1518_s12, %s2010_s12   ;;  %s1439_s11 = sphi %s1516_s11, %s2009_s11   ;;  %s1435_s10 = sphi %s1514_s10, %s2008_s10   ;;  %s1431_s9 = sphi %s1512_s9, %s2007_s9  }
  0x10   : > { %1979 = sst [smem:[#allocation13_spill]] %s1479_s21  ;;  %p56_p0 = scmp.ne.s32.totalorder %s1463_s17, %s1459_s16 }
  0x11   : > { %p57_p1 = scmp.eq.s32.totalorder %s1483_s22, 0  ;;  %p62_p2 = scmp.ne.s32.totalorder %s1459_s16, %s1455_s15 }
  0x12   : > { %p1587_p3 = scmp.eq.s32.totalorder %s1083_s23, 0  ;;  %p1591_p4 = scmp.eq.s32.totalorder %s1083_s23, 3 }
  0x13   : > { %p58_p5 = por %p57_p1, %p56_p0  ;;  %p1156_p7 = scmp.lt.s32.totalorder %s1483_s22, 4 }
  0x14   : > { %p1599_p6 = por %p1587_p3, %p62_p2  ;;  %s142_s29 = sand.u32 1, %s1463_s17  }
  0x15   : > { %s1104_s30 = sshll.u32 %s1479_s21, 12  ;;  %s1087_s3 = sshll.u32 %s142_s29, 8 }
  0x16   : > { %s1983_s0 = sld [smem:[#allocation18_spill]]  ;;  %s146_s7 = scalar_lea.vmem [#allocation3], %s1087_s3 }
  0x17   : > { %s154_s8 = sshll.u32 %s146_s7, 4  ;;  %p1611_p8 = pnand %p1156_p7, %p58_p5  ;;  %s155_s8 = int_to_ptr.vmem [resolvable:$true] %s154_s8 }
  0x18   : > { %s143_s23 = scalar_lea.sflag [#allocation4], %s142_s29  ;;  %s1292_s25 = scalar_lea.vmem %s155_s8, 4096 }
  0x19   : > { %p1281_p9 = pneg %p1611_p8  ;;  %p1293_p10 = scmp.ne.s32.totalorder %s155_s8, %s1292_s25 }
  0x1a   : > { %s1485_s24 = smov [#allocation3]  }
  0x1b   : > { %p1295_p11 = pnand %p1293_p10, %p1281_p9  ;;  %s1297_s2 = sshll.u32 %s1485_s24, 4  ;;  %s1298_s2 = int_to_ptr.vmem [resolvable:$false] %s1297_s2 }
  0x1c   : > { %s153_s6 = scalar_lea.hbm %s1983_s0, %s1104_s30  ;;  %s1299_s30 = scalar_lea.vmem %s1298_s2, 8192 }
  0x1d   : > { %p1296_p12 = pneg %p1295_p11  ;;  %p1300_p13 = scmp.lt.s32.totalorder %s155_s8, %s1298_s2 }
  0x1e   : > { %p1301_p0 = scmp.lt.s32.totalorder %s1299_s30, %s1292_s25 }
  0x20   : > { %p1302_p2 = por %p1301_p0, %p1300_p13 }
  0x22   : > { %p1303_p5 = pnand %p1302_p2, %p1296_p12 }
  0x24   : > { %1306 = shalt.err (!%p1303_p5)
}
  0x25   : > { %s1486_s3 = smov 128   ;;  %s1487_s2 = smov 8  }
  0x26   : > { %1148 = dma.hbm_to_vmem [thread:$0]  (!%p1611_p8), %s153_s6, 4096, %s155_s8, %s143_s23, %s1486_s3, %s1486_s3, %s1487_s2  }
  0x27   : > { %p1093_p9 = scmp.ge.s32.totalorder %s1483_s22, 1  ;;  %p186_p10 = scmp.lt.s32.totalorder %s1483_s22, 5 }
  0x28   : > { %s1084_s25 = sadd.s32 4294967294, %s1483_s22   ;;  %s36_s29 = sadd.s32 1, %s1475_s20 }
  0x29   : > { %p1621_p11 = pnand %p1093_p9, %p186_p10  ;;  %s77_s4 = sadd.s32 1, %s1451_s14 }
  0x2a   : > { %p38_p12 = scmp.ge.s32.totalorder %s36_s29, 2  ;;  %p84_p13 = scmp.ne.s32.totalorder %s1451_s14, %s1447_s13 }
  0x2b   : > { %p90_p0 = scmp.ne.s32.totalorder %s1447_s13, %s1443_s12  ;;  %s105_s5 = sadd.s32 1, %s1439_s11 }
  0x2c   : > { %s2019_s29 = smov (%p38_p12, %s36_s29), 0  ;;  %s1987_s6 = sadd.s32 1, %s1479_s21 }
  0x2d   : > { %1986 = sst [smem:[#allocation14_spill]] %s2019_s29  ;;  %s2021_s6 = smov (!%p38_p12, %s1987_s6), %s1479_s21 }
  0x2e   : > { %s73_s7 = ssub.s32 %s1475_s20, %s2019_s29  ;;  %p1642_p8 = por %p84_p13, %p57_p1 }
  0x2f   : > { %p42_p2 = scmp.ge.s32.totalorder %s2021_s6, 2  ;;  %p75_p5 = scmp.eq.s32.totalorder %s73_s7, 0 }
  0x30   : > { %p1648_p9 = por %p90_p0, %p1587_p3  ;;  %p115_p10 = scmp.ne.s32.totalorder %s1439_s11, %s1435_s10 }
  0x31   : > { %s2023_s6 = smov (%p42_p2, %s2021_s6), 0  ;;  %p121_p13 = scmp.ne.s32.totalorder %s1435_s10, %s1431_s9 }
  0x32   : > { %1990 = sst [smem:[#allocation15_spill]] %s2023_s6  ;;  %s44_s23 = ssub.s32 %s1479_s21, %s2023_s6 }
  0x33   : > { %s1657_s15 = scalar_select %p75_p5, %s1451_s14, %s77_s4  }
  0x34   : > { %p1663_p1 = por %p1591_p4, %p115_p10  ;;  %p47_p12 = scmp.eq.s32.totalorder %s44_s23, 0 }
  0x35   : > { %1991 = sst [smem:[#allocation16_spill]] %s1657_s15  ;;  %s102_s26 = sor.u32 %s73_s7, %s44_s23 }
  0x36   : > { %s1992_s30 = scalar_select %p1663_p1, 1, 0 }
  0x37   : > { %p103_p3 = scmp.eq.s32.totalorder %s102_s26, 0  ;;  %s1994_s3 = sadd.s32 1, %s1463_s17 }
  0x38   : > { %1993 = sst [smem:[#allocation17_spill]] %s1992_s30  ;;  %p122_p0 = scmp.eq.s32.totalorder %s1084_s25, 3 }
  0x39   : > { %s1672_s2 = scalar_select %p47_p12, %s1463_s17, %s1994_s3  }
  0x3a   : > { %s1675_s0 = scalar_select %p103_p3, %s1439_s11, %s105_s5  }
  0x3b   : > { %s164_s4 = sand.u32 1, %s1451_s14   ;;  %p1678_p2 = por %p122_p0, %p121_p13 }
  0x3c   : > { %s1090_s29 = sshll.u32 %s164_s4, 8  ;;  %s1105_s6 = sshll.u32 %s1475_s20, 8 }
  0x3d   : > { %s1995_s27 = scalar_select %p1678_p2, 1, 0 }
  0x3e   : > { %s168_s21 = scalar_lea.vmem [#allocation6], %s1090_s29  ;;  %s177_s7 = scalar_lea.hbm %s1967_s1, %s1105_s6 }
  0x3f   : > { %s178_s15 = sshll.u32 %s168_s21, 4  ;;  %p1690_p4 = pnand %p1156_p7, %p1642_p8  ;;  %s179_s15 = int_to_ptr.vmem [resolvable:$true] %s178_s15 }
  0x40   : > { %s165_s25 = scalar_lea.sflag [#allocation7], %s164_s4  ;;  %s1320_s23 = scalar_lea.vmem %s179_s15, 4096 }
  0x41   : > { %p1309_p5 = pneg %p1690_p4  ;;  %p1321_p10 = scmp.ne.s32.totalorder %s179_s15, %s1320_s23 }
  0x42   : > { %s1488_s21 = smov [#allocation6]  }
  0x43   : > { %p1323_p12 = pnand %p1321_p10, %p1309_p5  ;;  %s1325_s29 = sshll.u32 %s1488_s21, 4  ;;  %s1326_s29 = int_to_ptr.vmem [resolvable:$false] %s1325_s29 }
  0x44   : > { %s1327_s19 = scalar_lea.vmem %s1326_s29, 8192  ;;  %p1328_p13 = scmp.lt.s32.totalorder %s179_s15, %s1326_s29 }
  0x45   : > { %p1324_p3 = pneg %p1323_p12  ;;  %p1329_p0 = scmp.lt.s32.totalorder %s1327_s19, %s1320_s23 }
  0x47   : > { %p1330_p2 = por %p1329_p0, %p1328_p13 }
  0x49   : > { %p1331_p1 = pnand %p1330_p2, %p1324_p3 }
  0x4b   : > { %1334 = shalt.err (!%p1331_p1)
}
  0x4c   : > { %s1489_s6 = smov 512   ;;  %s1490_s8 = smov 256  }
  0x4d   : > { %s1491_s30 = smov 16   ;;  %190 = sbr.rel (%p1621_p11) target bundleno = 391 (0x187), region = 28 }
  0x4e   : > { %1151 = dma.hbm_to_vmem [thread:$0]  (!%p1690_p4), %s177_s7, 4096, %s179_s15, %s165_s25, %s1489_s6, %s1490_s8, %s1491_s30  }
  0x4f   : > { %s192_s26 = sand.u32 (!%p1621_p11), 1, %s1459_s16  }
  0x50   : > { %s1094_s3 = sshll.u32 (!%p1621_p11), %s192_s26, 8  ;;  %s193_s4 = scalar_lea.sflag (!%p1621_p11), [#allocation4], %s192_s26 }
  0x51   : > { %s1701_s21 = scalar_lea.vmem (!%p1621_p11), [#allocation3], %s1094_s3 }
  0x52   : > { %1418 = dma.done.wait (%p1599_p6), %s193_s4, 4096  }
  0x53   : > { %1420 = vsyncadd (%p1599_p6), %s193_s4, 4294963200  ;;  %s201_s23 = sand.u32 1, %s1447_s13  }
  0x54   : > { %s1095_s5 = sshll.u32 %s201_s23, 8  ;;  %s202_s15 = scalar_lea.sflag [#allocation7], %s201_s23 }
  0x55   : > { %s1708_s7 = scalar_lea.vmem [#allocation6], %s1095_s5 }
  0x56   : > { %1422 = dma.done.wait (%p1648_p9), %s202_s15, 4096  }
  0x57   : > { %1424 = vsyncadd (%p1648_p9), %s202_s15, 4294963200  ;;  %v1492_v0 = vmov 0.0   ;;  %v431_v1 = vld [vmem:[%s1708_s7 + $0xf8] sm:$0xff]  ;;  %v430_v2 = vld [vmem:[%s1708_s7 + $0xf0] sm:$0xff]  ;;  %s228_s28 = sand.u32 1, %s1435_s10   ;;  %s1997_s25 = sld [smem:[#allocation12_spill]] }
  0x58   : > { %496 = vmatprep.mubr.f32.mxu0 %v1492_v0  ;;  %592 = vmatprep.mubr.f32.mxu1 %v1492_v0  ;;  %v429_v3 = vld [vmem:[%s1708_s7 + $0xe8] sm:$0xff]  ;;  %v428_v4 = vld [vmem:[%s1708_s7 + $0xe0] sm:$0xff]  ;;  %v427_v5 = vld [vmem:[%s1708_s7 + $0xd8] sm:$0xff]  ;;  %s1096_s24 = sshll.u32 %s228_s28, 9  ;;  %s1099_s29 = sshll.u32 %s1467_s18, 1 }
  0x59   : > { %432 = vmatprep.subr.mxu0 %v431_v1  ;;  %1107 = vmatprep.subr.mxu1 %v431_v1  ;;  %v426_v6 = vld [vmem:[%s1708_s7 + $0xd0] sm:$0xff]  ;;  %v425_v7 = vld [vmem:[%s1708_s7 + $0xc8] sm:$0xff]  ;;  %v424_v8 = vld [vmem:[%s1708_s7 + $0xc0] sm:$0xff]  ;;  %s1813_s12 = scalar_lea.vmem [#allocation8], %s1096_s24  ;;  %s1998_s30 = sld [smem:[#allocation17_spill]] }
  0x5a   : > { %433 = vmatpush1.msra.mxu0 %v430_v2  ;;  %1123 = vmatpush1.msra.mxu1 %v430_v2  ;;  %v423_v9 = vld [vmem:[%s1708_s7 + $0xb8] sm:$0xff]  ;;  %v422_v10 = vld [vmem:[%s1708_s7 + $0xb0] sm:$0xff]  ;;  %v421_v11 = vld [vmem:[%s1708_s7 + $0xa8] sm:$0xff]  ;;  %s965_s8 = sshll.u32 %s1813_s12, 4  ;;  %s1999_s4 = sld [smem:[#allocation19_spill]]  ;;  %s1883_s8 = int_to_ptr.vmem [resolvable:$true] %s965_s8 }
  0x5b   : > { %434 = vmatprep.subr.mxu0 %v429_v3  ;;  %1108 = vmatprep.subr.mxu1 %v429_v3  ;;  %v420_v12 = vld [vmem:[%s1708_s7 + $0xa0] sm:$0xff]  ;;  %v419_v13 = vld [vmem:[%s1708_s7 + $0x98] sm:$0xff]  ;;  %v418_v14 = vld [vmem:[%s1708_s7 + $0x90] sm:$0xff]  ;;  %s1891_s23 = scalar_lea.sflag [#allocation5], %s228_s28  ;;  %s1335_s5 = scalar_lea.vmem %s1883_s8, 8192 }
  0x5c   : > { %435 = vmatpush1.msra.mxu0 %v428_v4  ;;  %1124 = vmatpush1.msra.mxu1 %v428_v4  ;;  %v417_v15 = vld [vmem:[%s1708_s7 + $0x88] sm:$0xff]  ;;  %v416_v16 = vld [vmem:[%s1708_s7 + $0x80] sm:$0xff]  ;;  %v415_v17 = vld [vmem:[%s1708_s7 + $0x78] sm:$0xff]  ;;  %p1336_p6 = scmp.ne.s32.totalorder %s1883_s8, %s1335_s5  ;;  %s1493_s15 = smov [#allocation8]  }
  0x5d   : > { %436 = vmatprep.subr.mxu0 %v427_v5  ;;  %1109 = vmatprep.subr.mxu1 %v427_v5  ;;  %v414_v18 = vld [vmem:[%s1708_s7 + $0x70] sm:$0xff]  ;;  %v413_v19 = vld [vmem:[%s1708_s7 + $0x68] sm:$0xff]  ;;  %v412_v20 = vld [vmem:[%s1708_s7 + $0x60] sm:$0xff]  ;;  %s1106_s19 = sshll.u32 %s1997_s25, 7 }
  0x5e   : > { %437 = vmatpush1.msra.mxu0 %v426_v6  ;;  %1125 = vmatpush1.msra.mxu1 %v426_v6  ;;  %v411_v21 = vld [vmem:[%s1708_s7 + $0x58] sm:$0xff]  ;;  %v410_v22 = vld [vmem:[%s1708_s7 + $0x50] sm:$0xff]  ;;  %v409_v23 = vld [vmem:[%s1708_s7 + $0x48] sm:$0xff]  ;;  %s962_s6 = sadd.s32 %s1106_s19, %s1099_s29 }
  0x5f   : > { %438 = vmatprep.subr.mxu0 %v425_v7  ;;  %1110 = vmatprep.subr.mxu1 %v425_v7  ;;  %v408_v24 = vld [vmem:[%s1708_s7 + $0x40] sm:$0xff]  ;;  %v407_v25 = vld [vmem:[%s1708_s7 + $0x38] sm:$0xff]  ;;  %v406_v26 = vld [vmem:[%s1708_s7 + $0x30] sm:$0xff]  ;;  %s1101_s18 = sshll.u32 %s962_s6, 7  ;;  %p2000_p7 = scmp.ne.s32.totalorder %s1998_s30, 0 }
  0x60   : > { %439 = vmatpush1.msra.mxu0 %v424_v8  ;;  %1126 = vmatpush1.msra.mxu1 %v424_v8  ;;  %v405_v27 = vld [vmem:[%s1708_s7 + $0x28] sm:$0xff]  ;;  %v404_v28 = vld [vmem:[%s1708_s7 + $0x20] sm:$0xff]  ;;  %v403_v29 = vld [vmem:[%s1708_s7 + $0x18] sm:$0xff] }
  0x61   : > { %440 = vmatprep.subr.mxu0 %v423_v9  ;;  %1111 = vmatprep.subr.mxu1 %v423_v9  ;;  %v402_v30 = vld [vmem:[%s1708_s7 + $0x10] sm:$0xff]  ;;  %v401_v31 = vld [vmem:[%s1708_s7 + $0x8] sm:$0xff]  ;;  %v400_v32 = vld [vmem:[%s1708_s7] sm:$0xff]  ;;  %p1337_p11 = pnand %p1336_p6, %p2000_p7  ;;  %s1339_s7 = sshll.u32 %s1493_s15, 4  ;;  %s1340_s7 = int_to_ptr.vmem [resolvable:$false] %s1339_s7 }
  0x62   : > { %441 = vmatpush1.msra.mxu0 %v422_v10  ;;  %1127 = vmatpush1.msra.mxu1 %v422_v10  ;;  %v368_v33 = vld [vmem:[%s1701_s21] sm:$0xff]  ;;  %v369_v35 = vld [vmem:[%s1701_s21 + $0x8] sm:$0xff]  ;;  %v370_v37 = vld [vmem:[%s1701_s21 + $0x10] sm:$0xff]  ;;  %s1341_s24 = scalar_lea.vmem %s1340_s7, 16384  ;;  %p1342_p9 = scmp.lt.s32.totalorder %s1883_s8, %s1340_s7 }
  0x63   : > { %442 = vmatprep.subr.mxu0 %v421_v11  ;;  %1112 = vmatprep.subr.mxu1 %v421_v11  ;;  %v384_v34 = vld [vmem:[%s1701_s21 + $0x80] sm:$0xff]  ;;  %v385_v36 = vld [vmem:[%s1701_s21 + $0x88] sm:$0xff]  ;;  %v386_v38 = vld [vmem:[%s1701_s21 + $0x90] sm:$0xff]  ;;  %p1338_p8 = pneg %p1337_p11  ;;  %p1343_p1 = scmp.lt.s32.totalorder %s1341_s24, %s1335_s5 }
  0x64   : > { %443 = vmatpush1.msra.mxu0 %v420_v12  ;;  %1128 = vmatpush1.msra.mxu1 %v420_v12  ;;  %v371_v39 = vld [vmem:[%s1701_s21 + $0x18] sm:$0xff]  ;;  %v372_v41 = vld [vmem:[%s1701_s21 + $0x20] sm:$0xff]  ;;  %v373_v43 = vld [vmem:[%s1701_s21 + $0x28] sm:$0xff] }
  0x65   : > { %444 = vmatprep.subr.mxu0 %v419_v13  ;;  %1113 = vmatprep.subr.mxu1 %v419_v13  ;;  %v387_v40 = vld [vmem:[%s1701_s21 + $0x98] sm:$0xff]  ;;  %v388_v42 = vld [vmem:[%s1701_s21 + $0xa0] sm:$0xff]  ;;  %v389_v44 = vld [vmem:[%s1701_s21 + $0xa8] sm:$0xff]  ;;  %p1344_p2 = por %p1343_p1, %p1342_p9 }
  0x66   : > { %445 = vmatpush1.msra.mxu0 %v418_v14  ;;  %1129 = vmatpush1.msra.mxu1 %v418_v14  ;;  %v374_v45 = vld [vmem:[%s1701_s21 + $0x30] sm:$0xff]  ;;  %v375_v47 = vld [vmem:[%s1701_s21 + $0x38] sm:$0xff]  ;;  %v376_v49 = vld [vmem:[%s1701_s21 + $0x40] sm:$0xff] }
  0x67   : > { %446 = vmatprep.subr.mxu0 %v417_v15  ;;  %1114 = vmatprep.subr.mxu1 %v417_v15  ;;  %v390_v46 = vld [vmem:[%s1701_s21 + $0xb0] sm:$0xff]  ;;  %v391_v48 = vld [vmem:[%s1701_s21 + $0xb8] sm:$0xff]  ;;  %v392_v50 = vld [vmem:[%s1701_s21 + $0xc0] sm:$0xff]  ;;  %p1345_p4 = pnand %p1344_p2, %p1338_p8 }
  0x68   : > { %447 = vmatpush1.msra.mxu0 %v416_v16  ;;  %1130 = vmatpush1.msra.mxu1 %v416_v16  ;;  %v377_v51 = vld [vmem:[%s1701_s21 + $0x48] sm:$0xff]  ;;  %v378_v53 = vld [vmem:[%s1701_s21 + $0x50] sm:$0xff]  ;;  %v379_v55 = vld [vmem:[%s1701_s21 + $0x58] sm:$0xff] }
  0x69   : > { %448 = vmatprep.subr.mxu0 %v415_v17  ;;  %1115 = vmatprep.subr.mxu1 %v415_v17  ;;  %v393_v52 = vld [vmem:[%s1701_s21 + $0xc8] sm:$0xff]  ;;  %v394_v54 = vld [vmem:[%s1701_s21 + $0xd0] sm:$0xff]  ;;  %v395_v56 = vld [vmem:[%s1701_s21 + $0xd8] sm:$0xff] }
  0x6a   : > { %449 = vmatpush1.msra.mxu0 %v414_v18  ;;  %1131 = vmatpush1.msra.mxu1 %v414_v18  ;;  %v380_v57 = vld [vmem:[%s1701_s21 + $0x60] sm:$0xff]  ;;  %v381_v59 = vld [vmem:[%s1701_s21 + $0x68] sm:$0xff]  ;;  %v382_v61 = vld [vmem:[%s1701_s21 + $0x70] sm:$0xff] }
  0x6b   : > { %450 = vmatprep.subr.mxu0 %v413_v19  ;;  %1116 = vmatprep.subr.mxu1 %v413_v19  ;;  %v396_v58 = vld [vmem:[%s1701_s21 + $0xe0] sm:$0xff]  ;;  %v397_v60 = vld [vmem:[%s1701_s21 + $0xe8] sm:$0xff]  ;;  %v398_v62 = vld [vmem:[%s1701_s21 + $0xf0] sm:$0xff] }
  0x6c   : > { %451 = vmatpush1.msra.mxu0 %v412_v20  ;;  %1132 = vmatpush1.msra.mxu1 %v412_v20  ;;  %v383_v63 = vld [vmem:[%s1701_s21 + $0x78] sm:$0xff] }
  0x6d   : > { %452 = vmatprep.subr.mxu0 %v411_v21  ;;  %1117 = vmatprep.subr.mxu1 %v411_v21  ;;  %v399_v1 = vld [vmem:[%s1701_s21 + $0xf8] sm:$0xff]  ;;  %s1881_s21 = scalar_lea.hbm %s1999_s4, %s1101_s18 }
  0x6e   : > { %453 = vmatpush1.msra.mxu0 %v410_v22  ;;  %1133 = vmatpush1.msra.mxu1 %v410_v22 }
  0x6f   : > { %454 = vmatprep.subr.mxu0 %v409_v23  ;;  %1118 = vmatprep.subr.mxu1 %v409_v23 }
  0x70   : > { %455 = vmatpush1.msra.mxu0 %v408_v24  ;;  %1134 = vmatpush1.msra.mxu1 %v408_v24 }
  0x71   : > { %456 = vmatprep.subr.mxu0 %v407_v25  ;;  %1119 = vmatprep.subr.mxu1 %v407_v25 }
  0x72   : > { %457 = vmatpush1.msra.mxu0 %v406_v26  ;;  %1135 = vmatpush1.msra.mxu1 %v406_v26 }
  0x73   : > { %458 = vmatprep.subr.mxu0 %v405_v27  ;;  %1120 = vmatprep.subr.mxu1 %v405_v27 }
  0x74   : > { %459 = vmatpush1.msra.mxu0 %v404_v28  ;;  %1136 = vmatpush1.msra.mxu1 %v404_v28 }
  0x75   : > { %460 = vmatprep.subr.mxu0 %v403_v29  ;;  %1121 = vmatprep.subr.mxu1 %v403_v29 }
  0x76   : > { %461 = vmatpush1.msra.mxu0 %v402_v30  ;;  %1137 = vmatpush1.msra.mxu1 %v402_v30 }
  0x77   : > { %462 = vmatprep.subr.mxu0 %v401_v31  ;;  %1122 = vmatprep.subr.mxu1 %v401_v31 }
  0x78   : > { %463 = vmatpush1.msra.mxu0 %v400_v32  ;;  %1138 = vmatpush1.msra.mxu1 %v400_v32 }
  0x79   : > { %497 = vmatmul.mubr.f32.vlgmr.msra.gmra.mxu0 %v368_v33  ;;  %593 = vmatmul.mubr.f32.vlgmr.msra.gmra.mxu1 %v384_v34 }
  0x7a   : > { %502 = vmatprep.mubr.f32.mxu0 %v1492_v0  ;;  %598 = vmatprep.mubr.f32.mxu1 %v1492_v0 }
  0x7d   : > { %503 = vmatmul.mubr.f32.gmra.mxu0 %v369_v35  ;;  %599 = vmatmul.mubr.f32.gmra.mxu1 %v385_v36 }
  0x7e   : > { %508 = vmatprep.mubr.f32.mxu0 %v1492_v0  ;;  %604 = vmatprep.mubr.f32.mxu1 %v1492_v0 }
  0x81   : > { %509 = vmatmul.mubr.f32.gmra.mxu0 %v370_v37  ;;  %605 = vmatmul.mubr.f32.gmra.mxu1 %v386_v38 }
  0x82   : > { %514 = vmatprep.mubr.f32.mxu0 %v1492_v0  ;;  %610 = vmatprep.mubr.f32.mxu1 %v1492_v0 }
  0x85   : > { %515 = vmatmul.mubr.f32.gmra.mxu0 %v371_v39  ;;  %611 = vmatmul.mubr.f32.gmra.mxu1 %v387_v40 }
  0x86   : > { %520 = vmatprep.mubr.f32.mxu0 %v1492_v0  ;;  %616 = vmatprep.mubr.f32.mxu1 %v1492_v0 }
  0x89   : > { %521 = vmatmul.mubr.f32.gmra.mxu0 %v372_v41  ;;  %617 = vmatmul.mubr.f32.gmra.mxu1 %v388_v42 }
  0x8a   : > { %526 = vmatprep.mubr.f32.mxu0 %v1492_v0  ;;  %622 = vmatprep.mubr.f32.mxu1 %v1492_v0 }
  0x8d   : > { %527 = vmatmul.mubr.f32.gmra.mxu0 %v373_v43  ;;  %623 = vmatmul.mubr.f32.gmra.mxu1 %v389_v44 }
  0x8e   : > { %532 = vmatprep.mubr.f32.mxu0 %v1492_v0  ;;  %628 = vmatprep.mubr.f32.mxu1 %v1492_v0 }
  0x91   : > { %533 = vmatmul.mubr.f32.gmra.mxu0 %v374_v45  ;;  %629 = vmatmul.mubr.f32.gmra.mxu1 %v390_v46 }
  0x92   : > { %538 = vmatprep.mubr.f32.mxu0 %v1492_v0  ;;  %634 = vmatprep.mubr.f32.mxu1 %v1492_v0 }
  0x95   : > { %539 = vmatmul.mubr.f32.gmra.mxu0 %v375_v47  ;;  %635 = vmatmul.mubr.f32.gmra.mxu1 %v391_v48 }
  0x96   : > { %544 = vmatprep.mubr.f32.mxu0 %v1492_v0  ;;  %640 = vmatprep.mubr.f32.mxu1 %v1492_v0 }
  0x99   : > { %545 = vmatmul.mubr.f32.gmra.mxu0 %v376_v49  ;;  %641 = vmatmul.mubr.f32.gmra.mxu1 %v392_v50 }
  0x9a   : > { %550 = vmatprep.mubr.f32.mxu0 %v1492_v0  ;;  %646 = vmatprep.mubr.f32.mxu1 %v1492_v0 }
  0x9d   : > { %551 = vmatmul.mubr.f32.gmra.mxu0 %v377_v51  ;;  %647 = vmatmul.mubr.f32.gmra.mxu1 %v393_v52 }
  0x9e   : > { %556 = vmatprep.mubr.f32.mxu0 %v1492_v0  ;;  %652 = vmatprep.mubr.f32.mxu1 %v1492_v0 }
  0xa1   : > { %557 = vmatmul.mubr.f32.gmra.mxu0 %v378_v53  ;;  %653 = vmatmul.mubr.f32.gmra.mxu1 %v394_v54 }
  0xa2   : > { %562 = vmatprep.mubr.f32.mxu0 %v1492_v0  ;;  %658 = vmatprep.mubr.f32.mxu1 %v1492_v0 }
  0xa5   : > { %563 = vmatmul.mubr.f32.gmra.mxu0 %v379_v55  ;;  %659 = vmatmul.mubr.f32.gmra.mxu1 %v395_v56 }
  0xa6   : > { %568 = vmatprep.mubr.f32.mxu0 %v1492_v0  ;;  %664 = vmatprep.mubr.f32.mxu1 %v1492_v0 }
  0xa9   : > { %569 = vmatmul.mubr.f32.gmra.mxu0 %v380_v57  ;;  %665 = vmatmul.mubr.f32.gmra.mxu1 %v396_v58 }
  0xaa   : > { %574 = vmatprep.mubr.f32.mxu0 %v1492_v0  ;;  %670 = vmatprep.mubr.f32.mxu1 %v1492_v0 }
  0xad   : > { %575 = vmatmul.mubr.f32.gmra.mxu0 %v381_v59  ;;  %671 = vmatmul.mubr.f32.gmra.mxu1 %v397_v60 }
  0xae   : > { %580 = vmatprep.mubr.f32.mxu0 %v1492_v0  ;;  %676 = vmatprep.mubr.f32.mxu1 %v1492_v0 }
  0xb1   : > { %581 = vmatmul.mubr.f32.gmra.mxu0 %v382_v61  ;;  %677 = vmatmul.mubr.f32.gmra.mxu1 %v398_v62 }
  0xb2   : > { %586 = vmatprep.mubr.f32.mxu0 %v1492_v0  ;;  %682 = vmatprep.mubr.f32.mxu1 %v1492_v0 }
  0xb5   : > { %587 = vmatmul.mubr.f32.gmra.mxu0 %v383_v63  ;;  %683 = vmatmul.mubr.f32.gmra.mxu1 %v399_v1 }
 0x139   : > { %v498_v2 = vpop.f32.mrf.mxu0  ;;  %v594_v3 = vpop.f32.mrf.mxu1 }
 0x13a   : > { %884 = vst [vmem:[%s1813_s12] sm:$0xff] %v498_v2  ;;  %916 = vst [vmem:[%s1813_s12 + $0x100] sm:$0xff] %v594_v3 }
 0x13b   : > { %v500_v0 = vpop.f32.mrf.mxu0  ;;  %v596_v4 = vpop.f32.mrf.mxu1 }
 0x13c   : > { %885 = vst [vmem:[%s1813_s12 + $0x8] sm:$0xff] %v500_v0  ;;  %917 = vst [vmem:[%s1813_s12 + $0x108] sm:$0xff] %v596_v4 }
 0x13d   : > { %v504_v5 = vpop.f32.mrf.mxu0  ;;  %v600_v6 = vpop.f32.mrf.mxu1 }
 0x13e   : > { %886 = vst [vmem:[%s1813_s12 + $0x10] sm:$0xff] %v504_v5  ;;  %918 = vst [vmem:[%s1813_s12 + $0x110] sm:$0xff] %v600_v6 }
 0x13f   : > { %v506_v7 = vpop.f32.mrf.mxu0  ;;  %v602_v8 = vpop.f32.mrf.mxu1 }
 0x140   : > { %887 = vst [vmem:[%s1813_s12 + $0x18] sm:$0xff] %v506_v7  ;;  %919 = vst [vmem:[%s1813_s12 + $0x118] sm:$0xff] %v602_v8 }
 0x141   : > { %v510_v9 = vpop.f32.mrf.mxu0  ;;  %v606_v10 = vpop.f32.mrf.mxu1 }
 0x142   : > { %888 = vst [vmem:[%s1813_s12 + $0x20] sm:$0xff] %v510_v9  ;;  %920 = vst [vmem:[%s1813_s12 + $0x120] sm:$0xff] %v606_v10 }
 0x143   : > { %v512_v11 = vpop.f32.mrf.mxu0  ;;  %v608_v12 = vpop.f32.mrf.mxu1 }
 0x144   : > { %889 = vst [vmem:[%s1813_s12 + $0x28] sm:$0xff] %v512_v11  ;;  %921 = vst [vmem:[%s1813_s12 + $0x128] sm:$0xff] %v608_v12 }
 0x145   : > { %v516_v13 = vpop.f32.mrf.mxu0  ;;  %v612_v14 = vpop.f32.mrf.mxu1 }
 0x146   : > { %890 = vst [vmem:[%s1813_s12 + $0x30] sm:$0xff] %v516_v13  ;;  %922 = vst [vmem:[%s1813_s12 + $0x130] sm:$0xff] %v612_v14 }
 0x147   : > { %v518_v15 = vpop.f32.mrf.mxu0  ;;  %v614_v16 = vpop.f32.mrf.mxu1 }
 0x148   : > { %891 = vst [vmem:[%s1813_s12 + $0x38] sm:$0xff] %v518_v15  ;;  %923 = vst [vmem:[%s1813_s12 + $0x138] sm:$0xff] %v614_v16 }
 0x149   : > { %v522_v17 = vpop.f32.mrf.mxu0  ;;  %v618_v18 = vpop.f32.mrf.mxu1 }
 0x14a   : > { %892 = vst [vmem:[%s1813_s12 + $0x40] sm:$0xff] %v522_v17  ;;  %924 = vst [vmem:[%s1813_s12 + $0x140] sm:$0xff] %v618_v18 }
 0x14b   : > { %v524_v19 = vpop.f32.mrf.mxu0  ;;  %v620_v20 = vpop.f32.mrf.mxu1 }
 0x14c   : > { %893 = vst [vmem:[%s1813_s12 + $0x48] sm:$0xff] %v524_v19  ;;  %925 = vst [vmem:[%s1813_s12 + $0x148] sm:$0xff] %v620_v20 }
 0x14d   : > { %v528_v21 = vpop.f32.mrf.mxu0  ;;  %v624_v22 = vpop.f32.mrf.mxu1 }
 0x14e   : > { %894 = vst [vmem:[%s1813_s12 + $0x50] sm:$0xff] %v528_v21  ;;  %926 = vst [vmem:[%s1813_s12 + $0x150] sm:$0xff] %v624_v22 }
 0x14f   : > { %v530_v23 = vpop.f32.mrf.mxu0  ;;  %v626_v24 = vpop.f32.mrf.mxu1 }
 0x150   : > { %895 = vst [vmem:[%s1813_s12 + $0x58] sm:$0xff] %v530_v23  ;;  %927 = vst [vmem:[%s1813_s12 + $0x158] sm:$0xff] %v626_v24 }
 0x151   : > { %v534_v25 = vpop.f32.mrf.mxu0  ;;  %v630_v26 = vpop.f32.mrf.mxu1 }
 0x152   : > { %896 = vst [vmem:[%s1813_s12 + $0x60] sm:$0xff] %v534_v25  ;;  %928 = vst [vmem:[%s1813_s12 + $0x160] sm:$0xff] %v630_v26 }
 0x153   : > { %v536_v27 = vpop.f32.mrf.mxu0  ;;  %v632_v28 = vpop.f32.mrf.mxu1 }
 0x154   : > { %897 = vst [vmem:[%s1813_s12 + $0x68] sm:$0xff] %v536_v27  ;;  %929 = vst [vmem:[%s1813_s12 + $0x168] sm:$0xff] %v632_v28 }
 0x155   : > { %v540_v29 = vpop.f32.mrf.mxu0  ;;  %v636_v30 = vpop.f32.mrf.mxu1 }
 0x156   : > { %898 = vst [vmem:[%s1813_s12 + $0x70] sm:$0xff] %v540_v29  ;;  %930 = vst [vmem:[%s1813_s12 + $0x170] sm:$0xff] %v636_v30 }
 0x157   : > { %v542_v31 = vpop.f32.mrf.mxu0  ;;  %v638_v32 = vpop.f32.mrf.mxu1 }
 0x158   : > { %899 = vst [vmem:[%s1813_s12 + $0x78] sm:$0xff] %v542_v31  ;;  %931 = vst [vmem:[%s1813_s12 + $0x178] sm:$0xff] %v638_v32 }
 0x159   : > { %v546_v33 = vpop.f32.mrf.mxu0  ;;  %v642_v34 = vpop.f32.mrf.mxu1 }
 0x15a   : > { %900 = vst [vmem:[%s1813_s12 + $0x80] sm:$0xff] %v546_v33  ;;  %932 = vst [vmem:[%s1813_s12 + $0x180] sm:$0xff] %v642_v34 }
 0x15b   : > { %v548_v35 = vpop.f32.mrf.mxu0  ;;  %v644_v36 = vpop.f32.mrf.mxu1 }
 0x15c   : > { %901 = vst [vmem:[%s1813_s12 + $0x88] sm:$0xff] %v548_v35  ;;  %933 = vst [vmem:[%s1813_s12 + $0x188] sm:$0xff] %v644_v36 }
 0x15d   : > { %v552_v37 = vpop.f32.mrf.mxu0  ;;  %v648_v38 = vpop.f32.mrf.mxu1 }
 0x15e   : > { %902 = vst [vmem:[%s1813_s12 + $0x90] sm:$0xff] %v552_v37  ;;  %934 = vst [vmem:[%s1813_s12 + $0x190] sm:$0xff] %v648_v38 }
 0x15f   : > { %v554_v39 = vpop.f32.mrf.mxu0  ;;  %v650_v40 = vpop.f32.mrf.mxu1 }
 0x160   : > { %903 = vst [vmem:[%s1813_s12 + $0x98] sm:$0xff] %v554_v39  ;;  %935 = vst [vmem:[%s1813_s12 + $0x198] sm:$0xff] %v650_v40 }
 0x161   : > { %v558_v41 = vpop.f32.mrf.mxu0  ;;  %v654_v42 = vpop.f32.mrf.mxu1 }
 0x162   : > { %904 = vst [vmem:[%s1813_s12 + $0xa0] sm:$0xff] %v558_v41  ;;  %936 = vst [vmem:[%s1813_s12 + $0x1a0] sm:$0xff] %v654_v42 }
 0x163   : > { %v560_v43 = vpop.f32.mrf.mxu0  ;;  %v656_v44 = vpop.f32.mrf.mxu1 }
 0x164   : > { %905 = vst [vmem:[%s1813_s12 + $0xa8] sm:$0xff] %v560_v43  ;;  %937 = vst [vmem:[%s1813_s12 + $0x1a8] sm:$0xff] %v656_v44 }
 0x165   : > { %v564_v45 = vpop.f32.mrf.mxu0  ;;  %v660_v46 = vpop.f32.mrf.mxu1 }
 0x166   : > { %906 = vst [vmem:[%s1813_s12 + $0xb0] sm:$0xff] %v564_v45  ;;  %938 = vst [vmem:[%s1813_s12 + $0x1b0] sm:$0xff] %v660_v46 }
 0x167   : > { %v566_v47 = vpop.f32.mrf.mxu0  ;;  %v662_v48 = vpop.f32.mrf.mxu1 }
 0x168   : > { %907 = vst [vmem:[%s1813_s12 + $0xb8] sm:$0xff] %v566_v47  ;;  %939 = vst [vmem:[%s1813_s12 + $0x1b8] sm:$0xff] %v662_v48 }
 0x169   : > { %v570_v49 = vpop.f32.mrf.mxu0  ;;  %v666_v50 = vpop.f32.mrf.mxu1 }
 0x16a   : > { %908 = vst [vmem:[%s1813_s12 + $0xc0] sm:$0xff] %v570_v49  ;;  %940 = vst [vmem:[%s1813_s12 + $0x1c0] sm:$0xff] %v666_v50 }
 0x16b   : > { %v572_v51 = vpop.f32.mrf.mxu0  ;;  %v668_v52 = vpop.f32.mrf.mxu1 }
 0x16c   : > { %909 = vst [vmem:[%s1813_s12 + $0xc8] sm:$0xff] %v572_v51  ;;  %941 = vst [vmem:[%s1813_s12 + $0x1c8] sm:$0xff] %v668_v52 }
 0x16d   : > { %v576_v53 = vpop.f32.mrf.mxu0  ;;  %v672_v54 = vpop.f32.mrf.mxu1 }
 0x16e   : > { %910 = vst [vmem:[%s1813_s12 + $0xd0] sm:$0xff] %v576_v53  ;;  %942 = vst [vmem:[%s1813_s12 + $0x1d0] sm:$0xff] %v672_v54 }
 0x16f   : > { %v578_v55 = vpop.f32.mrf.mxu0  ;;  %v674_v56 = vpop.f32.mrf.mxu1 }
 0x170   : > { %911 = vst [vmem:[%s1813_s12 + $0xd8] sm:$0xff] %v578_v55  ;;  %943 = vst [vmem:[%s1813_s12 + $0x1d8] sm:$0xff] %v674_v56 }
 0x171   : > { %v582_v57 = vpop.f32.mrf.mxu0  ;;  %v678_v58 = vpop.f32.mrf.mxu1 }
 0x172   : > { %912 = vst [vmem:[%s1813_s12 + $0xe0] sm:$0xff] %v582_v57  ;;  %944 = vst [vmem:[%s1813_s12 + $0x1e0] sm:$0xff] %v678_v58 }
 0x173   : > { %v584_v59 = vpop.f32.mrf.mxu0  ;;  %v680_v60 = vpop.f32.mrf.mxu1 }
 0x174   : > { %913 = vst [vmem:[%s1813_s12 + $0xe8] sm:$0xff] %v584_v59  ;;  %945 = vst [vmem:[%s1813_s12 + $0x1e8] sm:$0xff] %v680_v60 }
 0x175   : > { %v588_v61 = vpop.f32.mrf.mxu0  ;;  %v684_v62 = vpop.f32.mrf.mxu1 }
 0x176   : > { %914 = vst [vmem:[%s1813_s12 + $0xf0] sm:$0xff] %v588_v61  ;;  %946 = vst [vmem:[%s1813_s12 + $0x1f0] sm:$0xff] %v684_v62 }
 0x177   : > { %v590_v63 = vpop.f32.mrf.mxu0  ;;  %v686_v1 = vpop.f32.mrf.mxu1 }
 0x178   : > { %915 = vst [vmem:[%s1813_s12 + $0xf8] sm:$0xff] %v590_v63  ;;  %947 = vst [vmem:[%s1813_s12 + $0x1f8] sm:$0xff] %v686_v1 }
 0x179   : > { %1348 = shalt.err (!%p1345_p4)
}
 0x17a   : > { %s1349_s28 = scalar_lea.hbm %s1881_s21, 8192  ;;  %s1353_s29 = scalar_lea.hbm %s1999_s4, 32768 }
 0x17b   : > { %p1350_p5 = scmp.ne.s32.totalorder %s1881_s21, %s1349_s28  ;;  %p1354_p3 = scmp.lt.s32.totalorder %s1881_s21, %s1999_s4 }
 0x17c   : > { %p1355_p13 = scmp.lt.s32.totalorder %s1353_s29, %s1349_s28 }
 0x17d   : > { %p1351_p10 = pnand %p1350_p5, %p2000_p7 }
 0x17e   : > { %p1356_p0 = por %p1355_p13, %p1354_p3 }
 0x17f   : > { %p1352_p12 = pneg %p1351_p10 }
 0x181   : > { %p1357_p6 = pnand %p1356_p0, %p1352_p12 }
 0x183   : > { %1360 = shalt.err (!%p1357_p6)
}
 0x184   : > { %s1494_s18 = smov 256   ;;  %s1495_s26 = smov 512  }
 0x185   : > { %s1496_s3 = smov 16  }
 0x186   : > { %1143 = dma.vmem_to_hbm [thread:$0]  (%p2000_p7), %s1883_s8, 8192, %s1881_s21, %s1891_s23, %s1494_s18, %s1495_s26, %s1496_s3  }
 0x187 PF: > { %p1157_p11 = scmp.ge.s32.totalorder %s1483_s22, 2  ;;  %s980_s5 = sand.u32 1, %s1431_s9  }
 0x188   : > { %p2001_p8 = scmp.ne.s32.totalorder %s1995_s27, 0  ;;  %s981_s15 = scalar_lea.sflag [#allocation5], %s980_s5 }
 0x18a   : > { %p1153_p9 = pnand %p1157_p11, %p2001_p8 }
 0x18c   : > { %p1154_p1 = pneg %p1153_p9 }
 0x18e   : > { %1426 = dma.done.wait (%p1154_p1), %s981_s15, 8192  }
 0x18f   : > { %1428 = vsyncadd (%p1154_p1), %s981_s15, 4294959104  ;;  %s21_s22 = sadd.s32 1, %s1483_s22   ;;  %s2003_s8 = sld [smem:[#allocation16_spill]] }
 0x190   : > { %p1919_p2 = scmp.ge.s32.totalorder %s21_s22, 6   ;;  %s2004_s19 = sld [smem:[#allocation13_spill]] }
 0x191   : > { %s2005_s27 = sld [smem:[#allocation14_spill]]  ;;  %s2007_s9 = smov %s1435_s10 }
 0x192   : > { %s2006_s21 = sld [smem:[#allocation15_spill]]  ;;  %s2008_s10 = smov %s1439_s11 }
 0x193   : > { %s2009_s11 = smov %s1675_s0  ;;  %s2010_s12 = smov %s1447_s13 }
 0x194   : > { %s2011_s13 = smov %s1451_s14  ;;  %s2013_s15 = smov %s1459_s16 }
 0x195   : > { %s2012_s14 = smov %s2003_s8  ;;  %s2014_s16 = smov %s1463_s17 }
 0x196   : > { %s2015_s17 = smov %s1672_s2  ;;  %s2016_s18 = smov %s1475_s20 }
 0x197   : > { %s2017_s20 = smov %s2005_s27  ;;  %20 = sbr.rel (!%p1919_p2) target bundleno = 15 (0xf), region = 94 }
 0x19c   :  { %986 = vsyncpa [#allocation4], 1 }
 0x19d   :  { %988 = vsyncpa [#allocation4 + $0x1], 1 }
 0x19e   :  { %989 = vsyncpa [#allocation7], 1 }
 0x19f   :  { %991 = vsyncpa [#allocation7 + $0x1], 1 }
 0x1a0   :  { %992 = vsyncpa [#allocation5], 1 }
 0x1a1   :  { %994 = vsyncpa [#allocation5 + $0x1], 1 }

</bundles_post_ra>
